<compile_context>
chip_gen: v6e
topology: v6e:2x2x1
jax: 0.10.0
libtpu: 0.0.40
codegen_flags: <defaults>
</compile_context>

<pallas_src>
import functools

import jax
import jax.numpy as jnp
from jax.experimental import pallas as pl
from jax.experimental.pallas import tpu as pltpu

BN_EPS = 1e-5
LANE = 128
SUBPACK = 16  # bf16 sublane-pack native height


def _round_up(x, m):
    return (x + m - 1) // m * m


# ---------------------------------------------------------------------------
# Fused single-invocation kernel (small / moderate batches).
# ---------------------------------------------------------------------------
def _encoder_fused_kernel(x_ref,
                          w1_ref, g1_ref, b1_ref,
                          w2_ref, g2_ref, b2_ref,
                          w3_ref, g3_ref, b3_ref,
                          w4_ref,
                          o_ref,
                          *, batch: int):
    """4x(1x1-conv) + 3x(BatchNorm+ReLU) on one padded (B_pad, C_pad) tile."""
    b_pad = x_ref.shape[0]
    inv_b = jnp.float32(1.0 / batch)

    if batch != b_pad:
        # Only build / apply the padded-row mask when padding actually exists.
        rows = jax.lax.broadcasted_iota(jnp.int32, (b_pad, 1), 0)
        row_mask = (rows < batch).astype(jnp.float32)
    else:
        row_mask = None

    def bn_relu(y, g, b):
        # Training-mode BatchNorm2d over (B, C, 1, 1): per-channel stats over
        # the batch (biased variance), centered second pass for the variance,
        # folded affine, then ReLU.  Padded channels have gamma=beta=0 so
        # they stay exactly zero.
        mean = jnp.sum(y, axis=0, keepdims=True) * inv_b
        d = y - mean
        if row_mask is not None:
            d = d * row_mask          # padded rows must not contribute to var
        var = jnp.sum(d * d, axis=0, keepdims=True) * inv_b
        scale = g * jax.lax.rsqrt(var + BN_EPS)
        out = jnp.maximum(d * scale + b, 0.0)
        if row_mask is not None:
            out = out * row_mask      # keep padded rows zero for next layer
        return out

    # Layer 1: concat already fused into the packed input / stacked W1.
    y = jnp.dot(x_ref[...], w1_ref[...], preferred_element_type=jnp.float32)
    y = bn_relu(y, g1_ref[...], b1_ref[...])

    y = jnp.dot(y.astype(jnp.bfloat16), w2_ref[...],
                preferred_element_type=jnp.float32)
    y = bn_relu(y, g2_ref[...], b2_ref[...])

    y = jnp.dot(y.astype(jnp.bfloat16), w3_ref[...],
                preferred_element_type=jnp.float32)
    y = bn_relu(y, g3_ref[...], b3_ref[...])

    y = jnp.dot(y.astype(jnp.bfloat16), w4_ref[...],
                preferred_element_type=jnp.float32)
    o_ref[...] = y.astype(o_ref.dtype)


def _encoder_fused(xp, params, batch, out_dtype):
    b_pad = xp.shape[0]
    c_out_pad = params["w4"].shape[1]
    vmem = pl.BlockSpec(memory_space=pltpu.MemorySpace.VMEM)
    args = (xp,
            params["w1"], params["g1"], params["b1"],
            params["w2"], params["g2"], params["b2"],
            params["w3"], params["g3"], params["b3"],
            params["w4"])
    return pl.pallas_call(
        functools.partial(_encoder_fused_kernel, batch=batch),
        out_shape=jax.ShapeDtypeStruct((b_pad, c_out_pad), out_dtype),
        in_specs=[vmem] * len(args),
        out_specs=vmem,
        compiler_params=pltpu.CompilerParams(
            vmem_limit_bytes=32 * 1024 * 1024),
    )(*args)


# ---------------------------------------------------------------------------
# Batch-tiled path (large batches): per-layer grid over batch tiles.
#   pass 1 (per layer): (optional BN+ReLU of previous layer) -> matmul ->
#                        accumulate per-channel s / sum-of-squares
#   host: fold stats into scale/shift (tiny per-channel math)
# ---------------------------------------------------------------------------
def _layer_kernel(*refs, batch, tile_b, apply_bn, accum_stats):
    it = iter(refs)
    x_ref = next(it)
    if apply_bn:
        scale_ref = next(it)
        shift_ref = next(it)
    w_ref = next(it)
    y_ref = next(it)
    if accum_stats:
        s_ref = next(it)
        ss_ref = next(it)

    x = x_ref[...]                                    # (tile_b, Cin_pad) bf16
    if apply_bn:
        # Folded BatchNorm (scale/shift precomputed host-side) + ReLU in bf16.
        x = jnp.maximum(x * scale_ref[...] + shift_ref[...], 0.0)
        if accum_stats and batch % tile_b != 0:
            # Padded batch rows get relu(shift) != 0 in general; zero them so
            # this layer's statistics stay exact.  (Layer 1's padded input
            # rows are already zero from the wrapper, so no mask there.)
            rows = (pl.program_id(0) * tile_b
                    + jax.lax.broadcasted_iota(jnp.int32, (tile_b, 1), 0))
            x = x * (rows < batch).astype(x.dtype)

    y = jnp.dot(x, w_ref[...], preferred_element_type=jnp.float32)
    y_ref[...] = y.astype(y_ref.dtype)

    if accum_stats:
        @pl.when(pl.program_id(0) == 0)
        def _():
            s_ref[...] = jnp.zeros_like(s_ref)
            ss_ref[...] = jnp.zeros_like(ss_ref)
        s_ref[...] += jnp.sum(y, axis=0, keepdims=True)
        ss_ref[...] += jnp.sum(y * y, axis=0, keepdims=True)


def _layer_call(x, w, scale, shift, *, batch, tile_b, accum_stats, out_dtype):
    b_pad, c_in_pad = x.shape
    c_out_pad = w.shape[1]
    n_tiles = b_pad // tile_b
    apply_bn = scale is not None

    args = [x]
    in_specs = [pl.BlockSpec((tile_b, c_in_pad), lambda i: (i, 0))]
    if apply_bn:
        args += [scale, shift]
        in_specs += [pl.BlockSpec((1, c_in_pad), lambda i: (0, 0))] * 2
    args.append(w)
    in_specs.append(pl.BlockSpec((c_in_pad, c_out_pad), lambda i: (0, 0)))

    out_shapes = [jax.ShapeDtypeStruct((b_pad, c_out_pad), out_dtype)]
    out_specs = [pl.BlockSpec((tile_b, c_out_pad), lambda i: (i, 0))]
    if accum_stats:
        out_shapes += [jax.ShapeDtypeStruct((1, c_out_pad), jnp.float32)] * 2
        out_specs += [pl.BlockSpec((1, c_out_pad), lambda i: (0, 0))] * 2

    semantics = ("arbitrary",) if accum_stats else ("parallel",)
    return pl.pallas_call(
        functools.partial(_layer_kernel, batch=batch, tile_b=tile_b,
                          apply_bn=apply_bn, accum_stats=accum_stats),
        grid=(n_tiles,),
        out_shape=tuple(out_shapes) if accum_stats else out_shapes[0],
        in_specs=in_specs,
        out_specs=tuple(out_specs) if accum_stats else out_specs[0],
        compiler_params=pltpu.CompilerParams(
            dimension_semantics=semantics,
            vmem_limit_bytes=32 * 1024 * 1024),
    )(*args)


def _bn_scale_shift(s, ss, g, b, batch):
    # Host-side per-channel fold (tiny).  Padded channels: g=0 -> scale=0,
    # mean=0 -> shift=0, so they stay zero through the next layer.
    mean = s / batch
    var = jnp.maximum(ss / batch - mean * mean, 0.0)
    scale = g * jax.lax.rsqrt(var + BN_EPS)
    shift = b - mean * scale
    return scale.astype(jnp.bfloat16), shift.astype(jnp.bfloat16)


def _encoder_tiled(xp, params, batch, tile_b, out_dtype):
    # Layer 1: pure matmul (padded input rows already zero) + stats.
    y1, s1, ss1 = _layer_call(xp, params["w1"], None, None,
                              batch=batch, tile_b=tile_b,
                              accum_stats=True, out_dtype=jnp.bfloat16)
    sc1, sh1 = _bn_scale_shift(s1, ss1, params["g1"], params["b1"], batch)

    y2, s2, ss2 = _layer_call(y1, params["w2"], sc1, sh1,
                              batch=batch, tile_b=tile_b,
                              accum_stats=True, out_dtype=jnp.bfloat16)
    sc2, sh2 = _bn_scale_shift(s2, ss2, params["g2"], params["b2"], batch)

    y3, s3, ss3 = _layer_call(y2, params["w3"], sc2, sh2,
                              batch=batch, tile_b=tile_b,
                              accum_stats=True, out_dtype=jnp.bfloat16)
    sc3, sh3 = _bn_scale_shift(s3, ss3, params["g3"], params["b3"], batch)

    return _layer_call(y3, params["w4"], sc3, sh3,
                       batch=batch, tile_b=tile_b,
                       accum_stats=False, out_dtype=out_dtype)


# ---------------------------------------------------------------------------
# Parameters & wrapper
# ---------------------------------------------------------------------------
def init_encoder_params(key, c_in, c_out):
    """Deterministic parameter init matching the PyTorch module's shapes.

    Conv weights (C_out, C_in, 1, 1) are stored squeezed + transposed as
    (C_in, C_out), zero-padded to lane multiples and cast to bf16.  W1 is
    stored with its x1-half in rows [0:c] and its x2-half in rows
    [c_pad:c_pad+c] so the concat fuses into a single matmul against the
    packed input.  Raw f32 weights are kept for the pure-JAX reference.
    """
    dims = [c_in, c_in, c_in // 2, c_in // 4, c_out]
    pdims = [_round_up(d, LANE) for d in dims]
    keys = jax.random.split(key, 4)

    ws = []
    for i in range(4):
        fan_in, fan_out = dims[i], dims[i + 1]
        w = jax.random.normal(keys[i], (fan_in, fan_out), jnp.float32)
        ws.append(w * (1.0 / jnp.sqrt(jnp.float32(fan_in))))

    def pad_w(w, rows_p, cols_p):
        out = jnp.zeros((rows_p, cols_p), jnp.bfloat16)
        return out.at[:w.shape[0], :w.shape[1]].set(w.astype(jnp.bfloat16))

    c = c_in // 2                       # per-input channel count
    c_pad = _round_up(c, LANE)

    w1 = jnp.zeros((2 * c_pad, pdims[1]), jnp.bfloat16)
    w1 = w1.at[:c, :dims[1]].set(ws[0][:c].astype(jnp.bfloat16))
    w1 = w1.at[c_pad:c_pad + c, :dims[1]].set(ws[0][c:].astype(jnp.bfloat16))

    params = {
        "w1": w1,
        "w2": pad_w(ws[1], pdims[1], pdims[2]),
        "w3": pad_w(ws[2], pdims[2], pdims[3]),
        "w4": pad_w(ws[3], pdims[3], pdims[4]),
        "c_in": c_in, "c_out": c_out, "c_pad": c_pad,
        "_ref_ws": ws,
    }
    # BatchNorm affine params (PyTorch default gamma=1, beta=0) as (1, C_pad)
    # rows; padded channels get gamma=0/beta=0 so they stay exactly zero.
    for i, (d, dp) in enumerate(zip(dims[1:4], pdims[1:4]), start=1):
        params[f"g{i}"] = jnp.zeros((1, dp), jnp.float32).at[:, :d].set(1.0)
        params[f"b{i}"] = jnp.zeros((1, dp), jnp.float32)
    return params


def encoder_forward(x1, x2, params, *, tile_b=512, fused_max_rows=2048,
                    out_dtype=jnp.float32):
    """Equivalent of Encoder.forward(x1, x2) -> (B, C_out, 1, 1)."""
    b, c = x1.shape
    c_in, c_out, c_pad = params["c_in"], params["c_out"], params["c_pad"]
    if x2.shape != x1.shape:
        raise ValueError("x1 and x2 must have the same shape")
    if 2 * c != c_in:
        raise ValueError("concatenated channels must equal the module's C_in")
    if b < 2:
        # PyTorch BatchNorm2d in training mode rejects 1 value per channel.
        raise ValueError("training-mode BatchNorm needs batch >= 2")

    use_fused = b <= fused_max_rows
    if use_fused:
        b_pad = _round_up(b, SUBPACK)
    else:
        tile_b = max(SUBPACK, _round_up(tile_b, SUBPACK))
        b_pad = _round_up(b, tile_b)

    # Single wrapper-side pad/pack copy, already in bf16:
    #   x1 -> lanes [0:c], x2 -> lanes [c_pad:c_pad+c]
    # so the concat is fused into layer 1's single K = 2*c_pad matmul and no
    # in-kernel cast of the activations is needed.
    xp = jnp.zeros((b_pad, 2 * c_pad), jnp.bfloat16)
    xp = xp.at[:b, :c].set(x1.astype(jnp.bfloat16))
    xp = xp.at[:b, c_pad:c_pad + c].set(x2.astype(jnp.bfloat16))

    if use_fused:
        out = _encoder_fused(xp, params, b, out_dtype)
    else:
        out = _encoder_tiled(xp, params, b, tile_b, out_dtype)

    # Strip padding and match the PyTorch output shape (B, C_out, 1, 1).
    return out[:b, :c_out].reshape(b, c_out, 1, 1)


def encoder_reference(x1, x2, params):
    """Pure-JAX f32 reference of the PyTorch forward (training-mode BN)."""
    ws = params["_ref_ws"]
    x = jnp.concatenate([x1, x2], axis=1).astype(jnp.float32)

    def bn_relu(y):
        mean = jnp.mean(y, axis=0, keepdims=True)
        var = jnp.mean((y - mean) ** 2, axis=0, keepdims=True)
        return jnp.maximum((y - mean) * jax.lax.rsqrt(var + BN_EPS), 0.0)

    y = bn_relu(x @ ws[0])
    y = bn_relu(y @ ws[1])
    y = bn_relu(y @ ws[2])
    y = y @ ws[3]
    return y.reshape(x1.shape[0], params["c_out"], 1, 1)


if __name__ == "__main__":
    root = jax.random.PRNGKey(0)
    kp, k1, k2, k3, k4 = jax.random.split(root, 5)

    # Shapes consistent with Encoder.forward: x1, x2 are (B, c) and the
    # concatenated channel count 2*c equals the module's C_in.
    c = 4
    C_in, C_out = 2 * c, 4            # Encoder(C_in=8, C_out=4)
    params = init_encoder_params(kp, C_in, C_out)

    # --- small batch: fused single-invocation path (B=6 -> padded to 16) ---
    B = 6
    x1 = jax.random.normal(k1, (B, c), jnp.float32)
    x2 = jax.random.normal(k2, (B, c), jnp.float32)
    y = encoder_forward(x1, x2, params)
    jax.block_until_ready(y)
    assert y.shape == (B, C_out, 1, 1)
    assert bool(jnp.all(jnp.isfinite(y)))
    y_ref = encoder_reference(x1, x2, params)
    err = float(jnp.max(jnp.abs(y - y_ref)))
    ref_scale = float(jnp.max(jnp.abs(y_ref)))
    assert err <= 0.1 * ref_scale + 0.1, f"fused path mismatch: {err}"

    # --- larger batch: batch-tiled two-pass-BN path (forced small tiles) ---
    Bt = 40
    x1t = jax.random.normal(k3, (Bt, c), jnp.float32)
    x2t = jax.random.normal(k4, (Bt, c), jnp.float32)
    yt = encoder_forward(x1t, x2t, params, tile_b=16, fused_max_rows=0)
    jax.block_until_ready(yt)
    assert yt.shape == (Bt, C_out, 1, 1)
    assert bool(jnp.all(jnp.isfinite(yt)))
    yt_ref = encoder_reference(x1t, x2t, params)
    errt = float(jnp.max(jnp.abs(yt - yt_ref)))
    reft_scale = float(jnp.max(jnp.abs(yt_ref)))
    assert errt <= 0.1 * reft_scale + 0.1, f"tiled path mismatch: {errt}"

    print("KERNEL_OK")
</pallas_src>

<mosaic_0001>
module attributes {stable_mosaic.version = 11 : i64} {
  func.func @_encoder_fused_kernel(%arg0: memref<16x256xbf16, #tpu.memory_space<vmem>>, %arg1: memref<256x128xbf16, #tpu.memory_space<vmem>>, %arg2: memref<1x128xf32, #tpu.memory_space<vmem>>, %arg3: memref<1x128xf32, #tpu.memory_space<vmem>>, %arg4: memref<128x128xbf16, #tpu.memory_space<vmem>>, %arg5: memref<1x128xf32, #tpu.memory_space<vmem>>, %arg6: memref<1x128xf32, #tpu.memory_space<vmem>>, %arg7: memref<128x128xbf16, #tpu.memory_space<vmem>>, %arg8: memref<1x128xf32, #tpu.memory_space<vmem>>, %arg9: memref<1x128xf32, #tpu.memory_space<vmem>>, %arg10: memref<128x128xbf16, #tpu.memory_space<vmem>>, %arg11: memref<16x128xf32, #tpu.memory_space<vmem>>) attributes {dimension_semantics = [], scalar_prefetch = 0 : i64, scratch_operands = 0 : i64, tpu.core_type = #tpu.core_type<tc>} {
    %0 = tpu.iota {dimensions = array<i32: 0>} : vector<16x1xi32>
    %c6_i32 = arith.constant 6 : i32
    %1 = vector.broadcast %c6_i32 : i32 to vector<16x1xi32>
    %2 = arith.cmpi slt, %0, %1 : vector<16x1xi32>
    %3 = arith.extui %2 : vector<16x1xi1> to vector<16x1xi32>
    %4 = arith.sitofp %3 : vector<16x1xi32> to vector<16x1xf32>
    %c0 = arith.constant 0 : index
    %c0_0 = arith.constant 0 : index
    %5 = vector.load %arg0[%c0, %c0_0] : memref<16x256xbf16, #tpu.memory_space<vmem>>, vector<16x256xbf16>
    %c0_1 = arith.constant 0 : index
    %c0_2 = arith.constant 0 : index
    %6 = vector.load %arg1[%c0_1, %c0_2] : memref<256x128xbf16, #tpu.memory_space<vmem>>, vector<256x128xbf16>
    %cst = arith.constant dense<0.000000e+00> : vector<16x128xf32>
    %7 = tpu.matmul %5, %6, %cst {dimension_numbers = #tpu.dot_dimension_numbers<[1], [0], [0], [1], [0, 0, 1, 1], [], []>} : vector<16x256xbf16>, vector<256x128xbf16>, vector<16x128xf32> -> vector<16x128xf32>
    %c0_3 = arith.constant 0 : index
    %c0_4 = arith.constant 0 : index
    %8 = vector.load %arg2[%c0_3, %c0_4] : memref<1x128xf32, #tpu.memory_space<vmem>>, vector<1x128xf32>
    %c0_5 = arith.constant 0 : index
    %c0_6 = arith.constant 0 : index
    %9 = vector.load %arg3[%c0_5, %c0_6] : memref<1x128xf32, #tpu.memory_space<vmem>>, vector<1x128xf32>
    %cst_7 = arith.constant dense<0.000000e+00> : vector<128xf32>
    %10 = vector.multi_reduction <add>, %7, %cst_7 [0] : vector<16x128xf32> to vector<128xf32>
    %11 = vector.shape_cast %10 : vector<128xf32> to vector<1x128xf32>
    %cst_8 = arith.constant 0.166666672 : f32
    %12 = vector.broadcast %cst_8 : f32 to vector<1x128xf32>
    %13 = arith.mulf %11, %12 : vector<1x128xf32>
    %14 = vector.broadcast %13 : vector<1x128xf32> to vector<16x128xf32>
    %15 = arith.subf %7, %14 : vector<16x128xf32>
    %16 = vector.broadcast %4 : vector<16x1xf32> to vector<16x128xf32>
    %17 = arith.mulf %15, %16 : vector<16x128xf32>
    %18 = arith.mulf %17, %17 : vector<16x128xf32>
    %cst_9 = arith.constant dense<0.000000e+00> : vector<128xf32>
    %19 = vector.multi_reduction <add>, %18, %cst_9 [0] : vector<16x128xf32> to vector<128xf32>
    %20 = vector.shape_cast %19 : vector<128xf32> to vector<1x128xf32>
    %cst_10 = arith.constant 0.166666672 : f32
    %21 = vector.broadcast %cst_10 : f32 to vector<1x128xf32>
    %22 = arith.mulf %20, %21 : vector<1x128xf32>
    %cst_11 = arith.constant 9.99999974E-6 : f32
    %23 = vector.broadcast %cst_11 : f32 to vector<1x128xf32>
    %24 = arith.addf %22, %23 : vector<1x128xf32>
    %25 = math.rsqrt %24 : vector<1x128xf32>
    %26 = arith.mulf %8, %25 : vector<1x128xf32>
    %27 = vector.broadcast %26 : vector<1x128xf32> to vector<16x128xf32>
    %28 = arith.mulf %17, %27 : vector<16x128xf32>
    %29 = vector.broadcast %9 : vector<1x128xf32> to vector<16x128xf32>
    %30 = arith.addf %28, %29 : vector<16x128xf32>
    %cst_12 = arith.constant 0.000000e+00 : f32
    %31 = vector.broadcast %cst_12 : f32 to vector<16x128xf32>
    %32 = arith.maximumf %30, %31 : vector<16x128xf32>
    %33 = vector.broadcast %4 : vector<16x1xf32> to vector<16x128xf32>
    %34 = arith.mulf %32, %33 : vector<16x128xf32>
    %35 = arith.truncf %34 : vector<16x128xf32> to vector<16x128xbf16>
    %c0_13 = arith.constant 0 : index
    %c0_14 = arith.constant 0 : index
    %36 = vector.load %arg4[%c0_13, %c0_14] : memref<128x128xbf16, #tpu.memory_space<vmem>>, vector<128x128xbf16>
    %cst_15 = arith.constant dense<0.000000e+00> : vector<16x128xf32>
    %37 = tpu.matmul %35, %36, %cst_15 {dimension_numbers = #tpu.dot_dimension_numbers<[1], [0], [0], [1], [0, 0, 1, 1], [], []>} : vector<16x128xbf16>, vector<128x128xbf16>, vector<16x128xf32> -> vector<16x128xf32>
    %c0_16 = arith.constant 0 : index
    %c0_17 = arith.constant 0 : index
    %38 = vector.load %arg5[%c0_16, %c0_17] : memref<1x128xf32, #tpu.memory_space<vmem>>, vector<1x128xf32>
    %c0_18 = arith.constant 0 : index
    %c0_19 = arith.constant 0 : index
    %39 = vector.load %arg6[%c0_18, %c0_19] : memref<1x128xf32, #tpu.memory_space<vmem>>, vector<1x128xf32>
    %cst_20 = arith.constant dense<0.000000e+00> : vector<128xf32>
    %40 = vector.multi_reduction <add>, %37, %cst_20 [0] : vector<16x128xf32> to vector<128xf32>
    %41 = vector.shape_cast %40 : vector<128xf32> to vector<1x128xf32>
    %cst_21 = arith.constant 0.166666672 : f32
    %42 = vector.broadcast %cst_21 : f32 to vector<1x128xf32>
    %43 = arith.mulf %41, %42 : vector<1x128xf32>
    %44 = vector.broadcast %43 : vector<1x128xf32> to vector<16x128xf32>
    %45 = arith.subf %37, %44 : vector<16x128xf32>
    %46 = vector.broadcast %4 : vector<16x1xf32> to vector<16x128xf32>
    %47 = arith.mulf %45, %46 : vector<16x128xf32>
    %48 = arith.mulf %47, %47 : vector<16x128xf32>
    %cst_22 = arith.constant dense<0.000000e+00> : vector<128xf32>
    %49 = vector.multi_reduction <add>, %48, %cst_22 [0] : vector<16x128xf32> to vector<128xf32>
    %50 = vector.shape_cast %49 : vector<128xf32> to vector<1x128xf32>
    %cst_23 = arith.constant 0.166666672 : f32
    %51 = vector.broadcast %cst_23 : f32 to vector<1x128xf32>
    %52 = arith.mulf %50, %51 : vector<1x128xf32>
    %cst_24 = arith.constant 9.99999974E-6 : f32
    %53 = vector.broadcast %cst_24 : f32 to vector<1x128xf32>
    %54 = arith.addf %52, %53 : vector<1x128xf32>
    %55 = math.rsqrt %54 : vector<1x128xf32>
    %56 = arith.mulf %38, %55 : vector<1x128xf32>
    %57 = vector.broadcast %56 : vector<1x128xf32> to vector<16x128xf32>
    %58 = arith.mulf %47, %57 : vector<16x128xf32>
    %59 = vector.broadcast %39 : vector<1x128xf32> to vector<16x128xf32>
    %60 = arith.addf %58, %59 : vector<16x128xf32>
    %cst_25 = arith.constant 0.000000e+00 : f32
    %61 = vector.broadcast %cst_25 : f32 to vector<16x128xf32>
    %62 = arith.maximumf %60, %61 : vector<16x128xf32>
    %63 = vector.broadcast %4 : vector<16x1xf32> to vector<16x128xf32>
    %64 = arith.mulf %62, %63 : vector<16x128xf32>
    %65 = arith.truncf %64 : vector<16x128xf32> to vector<16x128xbf16>
    %c0_26 = arith.constant 0 : index
    %c0_27 = arith.constant 0 : index
    %66 = vector.load %arg7[%c0_26, %c0_27] : memref<128x128xbf16, #tpu.memory_space<vmem>>, vector<128x128xbf16>
    %cst_28 = arith.constant dense<0.000000e+00> : vector<16x128xf32>
    %67 = tpu.matmul %65, %66, %cst_28 {dimension_numbers = #tpu.dot_dimension_numbers<[1], [0], [0], [1], [0, 0, 1, 1], [], []>} : vector<16x128xbf16>, vector<128x128xbf16>, vector<16x128xf32> -> vector<16x128xf32>
    %c0_29 = arith.constant 0 : index
    %c0_30 = arith.constant 0 : index
    %68 = vector.load %arg8[%c0_29, %c0_30] : memref<1x128xf32, #tpu.memory_space<vmem>>, vector<1x128xf32>
    %c0_31 = arith.constant 0 : index
    %c0_32 = arith.constant 0 : index
    %69 = vector.load %arg9[%c0_31, %c0_32] : memref<1x128xf32, #tpu.memory_space<vmem>>, vector<1x128xf32>
    %cst_33 = arith.constant dense<0.000000e+00> : vector<128xf32>
    %70 = vector.multi_reduction <add>, %67, %cst_33 [0] : vector<16x128xf32> to vector<128xf32>
    %71 = vector.shape_cast %70 : vector<128xf32> to vector<1x128xf32>
    %cst_34 = arith.constant 0.166666672 : f32
    %72 = vector.broadcast %cst_34 : f32 to vector<1x128xf32>
    %73 = arith.mulf %71, %72 : vector<1x128xf32>
    %74 = vector.broadcast %73 : vector<1x128xf32> to vector<16x128xf32>
    %75 = arith.subf %67, %74 : vector<16x128xf32>
    %76 = vector.broadcast %4 : vector<16x1xf32> to vector<16x128xf32>
    %77 = arith.mulf %75, %76 : vector<16x128xf32>
    %78 = arith.mulf %77, %77 : vector<16x128xf32>
    %cst_35 = arith.constant dense<0.000000e+00> : vector<128xf32>
    %79 = vector.multi_reduction <add>, %78, %cst_35 [0] : vector<16x128xf32> to vector<128xf32>
    %80 = vector.shape_cast %79 : vector<128xf32> to vector<1x128xf32>
    %cst_36 = arith.constant 0.166666672 : f32
    %81 = vector.broadcast %cst_36 : f32 to vector<1x128xf32>
    %82 = arith.mulf %80, %81 : vector<1x128xf32>
    %cst_37 = arith.constant 9.99999974E-6 : f32
    %83 = vector.broadcast %cst_37 : f32 to vector<1x128xf32>
    %84 = arith.addf %82, %83 : vector<1x128xf32>
    %85 = math.rsqrt %84 : vector<1x128xf32>
    %86 = arith.mulf %68, %85 : vector<1x128xf32>
    %87 = vector.broadcast %86 : vector<1x128xf32> to vector<16x128xf32>
    %88 = arith.mulf %77, %87 : vector<16x128xf32>
    %89 = vector.broadcast %69 : vector<1x128xf32> to vector<16x128xf32>
    %90 = arith.addf %88, %89 : vector<16x128xf32>
    %cst_38 = arith.constant 0.000000e+00 : f32
    %91 = vector.broadcast %cst_38 : f32 to vector<16x128xf32>
    %92 = arith.maximumf %90, %91 : vector<16x128xf32>
    %93 = vector.broadcast %4 : vector<16x1xf32> to vector<16x128xf32>
    %94 = arith.mulf %92, %93 : vector<16x128xf32>
    %95 = arith.truncf %94 : vector<16x128xf32> to vector<16x128xbf16>
    %c0_39 = arith.constant 0 : index
    %c0_40 = arith.constant 0 : index
    %96 = vector.load %arg10[%c0_39, %c0_40] : memref<128x128xbf16, #tpu.memory_space<vmem>>, vector<128x128xbf16>
    %cst_41 = arith.constant dense<0.000000e+00> : vector<16x128xf32>
    %97 = tpu.matmul %95, %96, %cst_41 {dimension_numbers = #tpu.dot_dimension_numbers<[1], [0], [0], [1], [0, 0, 1, 1], [], []>} : vector<16x128xbf16>, vector<128x128xbf16>, vector<16x128xf32> -> vector<16x128xf32>
    %c0_42 = arith.constant 0 : index
    %c0_43 = arith.constant 0 : index
    %98 = vector.load %arg11[%c0_42, %c0_43] : memref<16x128xf32, #tpu.memory_space<vmem>>, vector<16x128xf32>
    tpu.vector_store %arg11[%c0_42, %c0_43], %97 {strides = array<i32>} : memref<16x128xf32, #tpu.memory_space<vmem>>, vector<16x128xf32>,
    return
  }
}

</mosaic_0001>

<bundles_post_ra>
// kernel: tpu_custom_call.1
= control target key start
LH: loop header
LB: loop body
LE: loop exit
PB: predicated region body
PF: predicated region fallthrough
CT: control target
= control target key end

     0   :  { %16 = vsyncpa [#allocation3], 0  ;;  %s1292_s0 = inlined_call_operand.hbm [shape: bf16[16,256], index: 0, kind: input, shape index: {}]   ;;  %s1293_s1 = inlined_call_operand.hbm [shape: bf16[256,128], index: 1, kind: input, shape index: {}]   ;;  %s1294_s2 = inlined_call_operand.vmem [shape: f32[1,128], index: 2, kind: input, shape index: {}]   ;;  %s1295_s3 = inlined_call_operand.vmem [shape: f32[1,128], index: 3, kind: input, shape index: {}]   ;;  %s1296_s4 = inlined_call_operand.hbm [shape: bf16[128,128], index: 4, kind: input, shape index: {}]   ;;  %s1297_s5 = inlined_call_operand.vmem [shape: f32[1,128], index: 5, kind: input, shape index: {}]   ;;  %s1298_s6 = inlined_call_operand.vmem [shape: f32[1,128], index: 6, kind: input, shape index: {}]   ;;  %s1299_s7 = inlined_call_operand.hbm [shape: bf16[128,128], index: 7, kind: input, shape index: {}]   ;;  %s1300_s8 = inlined_call_operand.vmem [shape: f32[1,128], index: 8, kind: input, shape index: {}]   ;;  %s1301_s9 = inlined_call_operand.vmem [shape: f32[1,128], index: 9, kind: input, shape index: {}]   ;;  %s1302_s10 = inlined_call_operand.hbm [shape: bf16[128,128], index: 10, kind: input, shape index: {}]   ;;  %s1303_s11 = inlined_call_operand.hbm [shape: f32[16,128], index: 11, kind: output, shape index: {}]  }
   0x1   :  { %17 = vsyncpa [#allocation6], 0 }
   0x2   :  { %18 = vsyncpa [#allocation9], 0 }
   0x3   :  { %19 = vsyncpa [#allocation4], 0  ;;  %s1122_s17 = smov [#allocation5]  }
   0x4   :  { %s37_s18 = sshll.u32 %s1122_s17, 4  ;;  %s38_s18 = int_to_ptr.vmem [resolvable:$true] %s37_s18 }
   0x5   :  { %s1002_s19 = scalar_lea.vmem %s38_s18, 2048  ;;  %p1007_p1 = scmp.lt.s32.totalorder %s38_s18, %s38_s18 }
   0x6   :  { %p1003_p0 = scmp.ne.s32.totalorder %s38_s18, %s1002_s19  ;;  %p1008_p2 = scmp.lt.s32.totalorder %s1002_s19, %s1002_s19 }
   0x8   :  { %p1009_p3 = por %p1008_p2, %p1007_p1 }
   0xa   :  { %p1010_p4 = pnand %p1009_p3, %p1003_p0 }
   0xc   :  { %1013 = shalt.err (!%p1010_p4)
}
   0xd   :  { %s1123_s20 = smov 64   ;;  %s1124_s21 = smov 4  }
   0xe   :  { %43 = dma.hbm_to_vmem [thread:$0]  %s1293_s1, 2048, %s38_s18, [#allocation6], %s1123_s20, %s1123_s20, %s1124_s21  }
   0xf   :  { %s1125_s24 = smov [#allocation8]   ;;  %s1126_s26 = smov [#allocation2]  }
  0x10   :  { %s69_s25 = sshll.u32 %s1125_s24, 4  ;;  %s25_s27 = sshll.u32 %s1126_s26, 4  ;;  %s70_s25 = int_to_ptr.vmem [resolvable:$true] %s69_s25  ;;  %s26_s27 = int_to_ptr.vmem [resolvable:$true] %s25_s27 }
  0x11   :  { %s1022_s28 = scalar_lea.vmem %s70_s25, 1024  ;;  %p1027_p6 = scmp.lt.s32.totalorder %s70_s25, %s70_s25 }
  0x12   :  { %p1023_p5 = scmp.ne.s32.totalorder %s70_s25, %s1022_s28  ;;  %p1028_p7 = scmp.lt.s32.totalorder %s1022_s28, %s1022_s28 }
  0x14   :  { %p1029_p8 = por %p1028_p7, %p1027_p6 }
  0x16   :  { %p1030_p9 = pnand %p1029_p8, %p1023_p5 }
  0x18   :  { %1033 = shalt.err (!%p1030_p9)
}
  0x19   :  { %75 = dma.hbm_to_vmem [thread:$0]  %s1299_s7, 1024, %s70_s25, [#allocation9], %s1123_s20, %s1123_s20, %s1124_s21  }
  0x1a   :  { %s1042_s1 = scalar_lea.vmem %s26_s27, 256  ;;  %p1047_p11 = scmp.lt.s32.totalorder %s26_s27, %s26_s27 }
  0x1b   :  { %p1043_p10 = scmp.ne.s32.totalorder %s26_s27, %s1042_s1  ;;  %p1048_p12 = scmp.lt.s32.totalorder %s1042_s1, %s1042_s1 }
  0x1d   :  { %p1049_p13 = por %p1048_p12, %p1047_p11 }
  0x1f   :  { %p1050_p0 = pnand %p1049_p13, %p1043_p10 }
  0x21   :  { %1053 = shalt.err (!%p1050_p0)
}
  0x22   :  { %s1127_s12 = smov 128   ;;  %s1128_s13 = smov 8  }
  0x23   :  { %31 = dma.hbm_to_vmem [thread:$0]  %s1292_s0, 256, %s26_s27, [#allocation3], %s1127_s12, %s1127_s12, %s1128_s13  }
  0x24   :  { %s1129_s16 = smov [#allocation7]   ;;  %s1130_s7 = smov [#allocation10]  }
  0x25   :  { %s53_s17 = sshll.u32 %s1129_s16, 4  ;;  %s85_s18 = sshll.u32 %s1130_s7, 4  ;;  %s54_s17 = int_to_ptr.vmem [resolvable:$true] %s53_s17  ;;  %s86_s18 = int_to_ptr.vmem [resolvable:$true] %s85_s18 }
  0x26   :  { %s1062_s19 = scalar_lea.vmem %s54_s17, 1024  ;;  %p1067_p2 = scmp.lt.s32.totalorder %s54_s17, %s54_s17 }
  0x27   :  { %p1063_p1 = scmp.ne.s32.totalorder %s54_s17, %s1062_s19  ;;  %p1068_p3 = scmp.lt.s32.totalorder %s1062_s19, %s1062_s19 }
  0x29   :  { %p1069_p4 = por %p1068_p3, %p1067_p2 }
  0x2b   :  { %p1070_p5 = pnand %p1069_p4, %p1063_p1 }
  0x2d   :  { %1073 = shalt.err (!%p1070_p5)
}
  0x2e   :  { %59 = dma.hbm_to_vmem [thread:$0]  %s1296_s4, 1024, %s54_s17, [#allocation6], %s1123_s20, %s1123_s20, %s1124_s21  }
  0x2f   :  { %s1082_s0 = scalar_lea.vmem %s86_s18, 1024  ;;  %p1087_p7 = scmp.lt.s32.totalorder %s86_s18, %s86_s18 }
  0x30   :  { %p1083_p6 = scmp.ne.s32.totalorder %s86_s18, %s1082_s0  ;;  %p1088_p8 = scmp.lt.s32.totalorder %s1082_s0, %s1082_s0 }
  0x32   :  { %p1089_p9 = por %p1088_p8, %p1087_p7 }
  0x34   :  { %p1090_p10 = pnand %p1089_p9, %p1083_p6 }
  0x36   :  { %1093 = shalt.err (!%p1090_p10)
}
  0x37   :  { %91 = dma.hbm_to_vmem [thread:$0]  %s1302_s10, 1024, %s86_s18, [#allocation9], %s1123_s20, %s1123_s20, %s1124_s21  }
  0x38   :  { %1114 = dma.done.wait [#allocation3], 256  }
  0x39   :  { %1115 = vsyncadd [#allocation3], 4294967040 }
  0x3a   :  { %1116 = dma.done.wait [#allocation6], 3072  }
  0x3b   :  { %1117 = vsyncadd [#allocation6], 4294964224 }
  0x3c   :  { %1118 = dma.done.wait [#allocation9], 2048  }
  0x3d   :  { %1119 = vsyncadd [#allocation9], 4294965248  ;;  %v945_v0 = vld [vmem:[#allocation5 + $0x78] sm:$0xff]   ;;  %v947_v2 = vld [vmem:[#allocation5 + $0x70] sm:$0xff]   ;;  %v1131_v18 = vmov 0.0   ;;  %vm1132_vm0 = vmmov 0   ;;  %v108_v35 = vlaneseq }
  0x3e   :  { %v946_v1 = vld [vmem:[#allocation5 + $0x38] sm:$0xff]   ;;  %824 = vmatprep.subr.bf16.mxu0 %v945_v0  ;;  %v948_v3 = vld [vmem:[#allocation5 + $0x30] sm:$0xff]   ;;  %v949_v4 = vld [vmem:[#allocation5 + $0x68] sm:$0xff]   ;;  %873 = vmatprep.subr.bf16.mxu1 %v1131_v18 }
  0x3f   :  { %825 = vmatpush3.bf16.msra.mxu0 %v946_v1  ;;  %v950_v5 = vld [vmem:[#allocation5 + $0x28] sm:$0xff]   ;;  %v951_v6 = vld [vmem:[#allocation5 + $0x60] sm:$0xff]   ;;  %v953_v8 = vld [vmem:[#allocation5 + $0x58] sm:$0xff]   ;;  %889 = vmatprep.mubr.msk.bf16.mxu1 %vm1132_vm0, %v1131_v18  ;;  %v109_v38 = vshrl.u32 %v108_v35, 7 }
  0x40   :  { %826 = vmatprep.subr.bf16.mxu0 %v947_v2  ;;  %v952_v7 = vld [vmem:[#allocation5 + $0x20] sm:$0xff]   ;;  %v954_v9 = vld [vmem:[#allocation5 + $0x18] sm:$0xff]   ;;  %v955_v10 = vld [vmem:[#allocation5 + $0x50] sm:$0xff]  }
  0x41   :  { %v956_v11 = vld [vmem:[#allocation5 + $0x10] sm:$0xff]   ;;  %v957_v13 = vld [vmem:[#allocation5 + $0x48] sm:$0xff]   ;;  %v959_v15 = vld [vmem:[#allocation5 + $0x40] sm:$0xff]   ;;  %vm111_vm1 = vcmp.lt.s32.totalorder %v109_v38, 6  ;;  %v1245_v60 = vsub.s32 0, %v109_v38 }
  0x42   :  { %v963_v12 = vld [vmem:[#allocation2 + $0x4] ss:$8 sps:$4 sm:$0xff]   ;;  %v958_v14 = vld [vmem:[#allocation5 + $0x8] sm:$0xff]   ;;  %v960_v16 = vld [vmem:[#allocation5] sm:$0xff]   ;;  %v1239_v43 = vsel %vm111_vm1, 1.0, %v1131_v18 }
  0x43   :  { %827 = vmatpush3.bf16.msra.mxu0 %v948_v3  ;;  %289 = vmatprep.mubr.bf16.mxu0 %v963_v12  ;;  %v961_v17 = vld [vmem:[#allocation2] ss:$8 sps:$4 sm:$0xff]   ;;  %v966_v21 = vld [vmem:[#allocation7 + $0x28] sm:$0xff]   ;;  %v967_v22 = vld [vmem:[#allocation7 + $0x20] sm:$0xff]  }
  0x44   :  { %828 = vmatprep.subr.bf16.mxu0 %v949_v4  ;;  %v964_v19 = vld [vmem:[#allocation7 + $0x38] sm:$0xff]   ;;  %v965_v20 = vld [vmem:[#allocation7 + $0x30] sm:$0xff]   ;;  %v970_v25 = vld [vmem:[#allocation7 + $0x8] sm:$0xff]  }
  0x45   :  { %874 = vmatpush3.bf16.msra.mxu1 %v964_v19  ;;  %v968_v23 = vld [vmem:[#allocation7 + $0x18] sm:$0xff]   ;;  %v969_v24 = vld [vmem:[#allocation7 + $0x10] sm:$0xff]   ;;  %v971_v26 = vld [vmem:[#allocation7] sm:$0xff]  }
  0x46   :  { %875 = vmatprep.subr.bf16.mxu1 %v1131_v18  ;;  %v298_v59 = vld [vmem:[%s1294_s2] sm:$0x1]  ;;  %v974_v12 = vld [vmem:[#allocation8 + $0x28] sm:$0xff]  }
  0x47   :  { %829 = vmatpush3.bf16.msra.mxu0 %v950_v5  ;;  %v797_v0 = vld [vmem:[%s1295_s3] ss:$0 sm:$0xff] }
  0x48   :  { %830 = vmatprep.subr.bf16.mxu0 %v951_v6 }
  0x49   :  { %876 = vmatpush3.bf16.msra.mxu1 %v965_v20 }
  0x4a   :  { %877 = vmatprep.subr.bf16.mxu1 %v1131_v18 }
  0x4b   :  { %831 = vmatpush3.bf16.msra.mxu0 %v952_v7 }
  0x4c   :  { %832 = vmatprep.subr.bf16.mxu0 %v953_v8 }
  0x4d   :  { %878 = vmatpush3.bf16.msra.mxu1 %v966_v21 }
  0x4e   :  { %879 = vmatprep.subr.bf16.mxu1 %v1131_v18 }
  0x4f   :  { %833 = vmatpush3.bf16.msra.mxu0 %v954_v9 }
  0x50   :  { %834 = vmatprep.subr.bf16.mxu0 %v955_v10  ;;  %v972_v10 = vld [vmem:[#allocation8 + $0x38] sm:$0xff]  }
  0x51   :  { %880 = vmatpush3.bf16.msra.mxu1 %v967_v22 }
  0x52   :  { %881 = vmatprep.subr.bf16.mxu1 %v1131_v18 }
  0x53   :  { %835 = vmatpush3.bf16.msra.mxu0 %v956_v11  ;;  %v973_v11 = vld [vmem:[#allocation8 + $0x30] sm:$0xff]  }
  0x54   :  { %836 = vmatprep.subr.bf16.mxu0 %v957_v13  ;;  %v975_v13 = vld [vmem:[#allocation8 + $0x20] sm:$0xff]  }
  0x55   :  { %882 = vmatpush3.bf16.msra.mxu1 %v968_v23 }
  0x56   :  { %883 = vmatprep.subr.bf16.mxu1 %v1131_v18 }
  0x57   :  { %837 = vmatpush3.bf16.msra.mxu0 %v958_v14  ;;  %v976_v14 = vld [vmem:[#allocation8 + $0x18] sm:$0xff]  }
  0x58   :  { %838 = vmatprep.subr.bf16.mxu0 %v959_v15  ;;  %v977_v15 = vld [vmem:[#allocation8 + $0x10] sm:$0xff]  }
  0x59   :  { %884 = vmatpush3.bf16.msra.mxu1 %v969_v24 }
  0x5a   :  { %885 = vmatprep.subr.bf16.mxu1 %v1131_v18 }
  0x5b   :  { %839 = vmatpush3.bf16.msra.mxu0 %v960_v16  ;;  %v978_v16 = vld [vmem:[#allocation8 + $0x8] sm:$0xff]  }
  0x5c   :  { %893 = vmatprep.subr.bf16.mxu0 %v1131_v18 }
  0x5d   :  { %886 = vmatpush3.bf16.msra.mxu1 %v970_v25 }
  0x5e   :  { %290 = vmatmul.mubr.bf16.vlgmr.msra.gmra.mxu0 %v961_v17  ;;  %887 = vmatprep.subr.bf16.mxu1 %v1131_v18  ;;  %v979_v17 = vld [vmem:[#allocation8] sm:$0xff]  }
  0x5f   :  { %909 = vmatprep.mubr.msk.bf16.mxu0 %vm1132_vm0, %v1131_v18  ;;  %894 = vmatpush3.bf16.msra.mxu0 %v972_v10 }
  0x60   :  { %895 = vmatprep.subr.bf16.mxu0 %v1131_v18 }
  0x61   :  { %888 = vmatpush3.bf16.msra.mxu1 %v971_v26 }
  0x62   :  { %913 = vmatprep.subr.bf16.mxu1 %v1131_v18 }
  0x63   :  { %896 = vmatpush3.bf16.msra.mxu0 %v973_v11 }
  0x64   :  { %897 = vmatprep.subr.bf16.mxu0 %v1131_v18 }
  0x67   :  { %898 = vmatpush3.bf16.msra.mxu0 %v974_v12 }
  0x68   :  { %899 = vmatprep.subr.bf16.mxu0 %v1131_v18 }
  0x6b   :  { %900 = vmatpush3.bf16.msra.mxu0 %v975_v13 }
  0x6c   :  { %901 = vmatprep.subr.bf16.mxu0 %v1131_v18 }
  0x6f   :  { %902 = vmatpush3.bf16.msra.mxu0 %v976_v14 }
  0x70   :  { %903 = vmatprep.subr.bf16.mxu0 %v1131_v18 }
  0x73   :  { %904 = vmatpush3.bf16.msra.mxu0 %v977_v15 }
  0x74   :  { %905 = vmatprep.subr.bf16.mxu0 %v1131_v18 }
  0x77   :  { %906 = vmatpush3.bf16.msra.mxu0 %v978_v16 }
  0x78   :  { %907 = vmatprep.subr.bf16.mxu0 %v1131_v18 }
  0x7b   :  { %908 = vmatpush3.bf16.msra.mxu0 %v979_v17 }
 0x11e   :  { %v840_v27 = vpop.f32.mrf.mxu0 }
 0x120   :  { %v841_v28 = vpop.f32.mrf.mxu0 }
 0x121   :  { %v842_v31 = vadd.f32 %v841_v28, %v840_v27 }
 0x122   :  { %v843_v29 = vpop.f32.mrf.mxu0 }
 0x124   :  { %v844_v30 = vpop.f32.mrf.mxu0 }
 0x125   :  { %v845_v32 = vadd.f32 %v844_v30, %v843_v29 }
 0x127   :  { %v300_v33 = vadd.f32 %v845_v32, %v842_v31 }
 0x129   :  { %v301_v34 = vrot.slane %v300_v33, 4 }
 0x12b   :  { %v302_v36 = vadd.f32 %v301_v34, %v300_v33 }
 0x12d   :  { %v303_v37 = vrot.slane %v302_v36, 2 }
 0x12f   :  { %v304_v39 = vadd.f32 %v303_v37, %v302_v36 }
 0x131   :  { %v305_v40 = vrot.slane %v304_v39, 1 }
 0x133   :  { %v306_v41 = vadd.f32 %v305_v40, %v304_v39 }
 0x135   :  { %v307_v42 = vmul.f32 0.16666667, %v306_v41 }
 0x137   :  { %v308_v44 = vsub.f32 %v842_v31, %v307_v42  ;;  %v309_v45 = vsub.f32 %v845_v32, %v307_v42 }
 0x139   :  { %v310_v46 = vmul.f32 %v1239_v43, %v308_v44  ;;  %v311_v47 = vmul.f32 0.0, %v309_v45 }
 0x13b   :  { %v312_v48 = vmul.f32 %v310_v46, %v310_v46  ;;  %v313_v49 = vmul.f32 %v311_v47, %v311_v47 }
 0x13d   :  { %v314_v50 = vadd.f32 %v313_v49, %v312_v48 }
 0x13f   :  { %v315_v51 = vrot.slane %v314_v50, 4 }
 0x141   :  { %v316_v52 = vadd.f32 %v315_v51, %v314_v50  ;;  %v806_v51 = vld [vmem:[%s1298_s6] ss:$0 sm:$0xff] }
 0x143   :  { %v317_v53 = vrot.slane %v316_v52, 2 }
 0x145   :  { %v318_v54 = vadd.f32 %v317_v53, %v316_v52 }
 0x147   :  { %v319_v55 = vrot.slane %v318_v54, 1 }
 0x149   :  { %v320_v56 = vadd.f32 %v319_v55, %v318_v54 }
 0x14b   :  { %v321_v57 = vmul.f32 0.16666667, %v320_v56 }
 0x14d   :  { %v322_v58 = vadd.f32 1e-05, %v321_v57 }
 0x14f   :  { %988 = vrsqrt.f32 %v322_v58 }
 0x15c   :  { %v989_v61 = vpop.eup %988 }
 0x15d   :  { %v324_v62 = vmul.f32 %v989_v61, %v298_v59 }
 0x15f   :  { %v329_v63 = vrot.slane %v324_v62, %v1245_v60  ;;  %v980_v62 = vld [vmem:[#allocation10 + $0x38] sm:$0xff]  }
 0x161   :  { %v331_v1 = vmul.f32 %v329_v63, %v310_v46  ;;  %v332_v2 = vmul.f32 %v329_v63, %v311_v47  ;;  %v451_v47 = vld [vmem:[%s1297_s5] sm:$0x1] }
 0x162   :  { %v981_v63 = vld [vmem:[#allocation10 + $0x30] sm:$0xff]  }
 0x163   :  { %v339_v3 = vadd.f32 %v797_v0, %v331_v1  ;;  %v340_v4 = vadd.f32 %v797_v0, %v332_v2  ;;  %v982_v0 = vld [vmem:[#allocation10 + $0x28] sm:$0xff]   ;;  %v983_v1 = vld [vmem:[#allocation10 + $0x20] sm:$0xff]   ;;  %v984_v2 = vld [vmem:[#allocation10 + $0x18] sm:$0xff]  }
 0x165   :  { %v341_v5 = vmax.f32 %v339_v3, 0.0  ;;  %v342_v6 = vmax.f32 %v340_v4, 0.0  ;;  %v985_v3 = vld [vmem:[#allocation10 + $0x10] sm:$0xff]   ;;  %v986_v4 = vld [vmem:[#allocation10 + $0x8] sm:$0xff]  }
 0x167   :  { %v343_v7 = vmul.f32 %v1239_v43, %v341_v5  ;;  %v344_v8 = vmul.f32 0.0, %v342_v6  ;;  %v987_v5 = vld [vmem:[#allocation10] sm:$0xff]  }
 0x169   :  { %v345_v9 = vpack.c.bf16 %v344_v8, %v343_v7 }
 0x16b   :  { %890 = vmatmul.mubr.bf16.vlgmr.msra.gmra.mxu1 %v345_v9 }
 0x16c   :  { %929 = vmatprep.mubr.msk.bf16.mxu1 %vm1132_vm0, %v1131_v18  ;;  %914 = vmatpush3.bf16.msra.mxu1 %v980_v62 }
 0x16d   :  { %915 = vmatprep.subr.bf16.mxu1 %v1131_v18 }
 0x170   :  { %916 = vmatpush3.bf16.msra.mxu1 %v981_v63 }
 0x171   :  { %917 = vmatprep.subr.bf16.mxu1 %v1131_v18 }
 0x174   :  { %918 = vmatpush3.bf16.msra.mxu1 %v982_v0 }
 0x175   :  { %919 = vmatprep.subr.bf16.mxu1 %v1131_v18 }
 0x178   :  { %920 = vmatpush3.bf16.msra.mxu1 %v983_v1 }
 0x179   :  { %921 = vmatprep.subr.bf16.mxu1 %v1131_v18 }
 0x17c   :  { %922 = vmatpush3.bf16.msra.mxu1 %v984_v2 }
 0x17d   :  { %923 = vmatprep.subr.bf16.mxu1 %v1131_v18 }
 0x180   :  { %924 = vmatpush3.bf16.msra.mxu1 %v985_v3 }
 0x181   :  { %925 = vmatprep.subr.bf16.mxu1 %v1131_v18 }
 0x184   :  { %926 = vmatpush3.bf16.msra.mxu1 %v986_v4 }
 0x185   :  { %927 = vmatprep.subr.bf16.mxu1 %v1131_v18 }
 0x188   :  { %928 = vmatpush3.bf16.msra.mxu1 %v987_v5 }
 0x22b   :  { %v444_v19 = vpop.f32.mrf.mxu1 }
 0x22d   :  { %v891_v20 = vpop.f32.mrf.mxu1 }
 0x22f   :  { %v447_v21 = vpop.f32.mrf.mxu1 }
 0x230   :  { %v453_v22 = vadd.f32 %v447_v21, %v444_v19 }
 0x231   :  { %v892_v23 = vpop.f32.mrf.mxu1 }
 0x232   :  { %v454_v24 = vrot.slane %v453_v22, 4 }
 0x234   :  { %v455_v25 = vadd.f32 %v454_v24, %v453_v22 }
 0x236   :  { %v456_v26 = vrot.slane %v455_v25, 2 }
 0x238   :  { %v457_v27 = vadd.f32 %v456_v26, %v455_v25 }
 0x23a   :  { %v458_v28 = vrot.slane %v457_v27, 1 }
 0x23c   :  { %v459_v29 = vadd.f32 %v458_v28, %v457_v27 }
 0x23e   :  { %v460_v30 = vmul.f32 0.16666667, %v459_v29 }
 0x240   :  { %v461_v31 = vsub.f32 %v444_v19, %v460_v30  ;;  %v462_v32 = vsub.f32 %v447_v21, %v460_v30 }
 0x242   :  { %v463_v33 = vmul.f32 %v1239_v43, %v461_v31  ;;  %v464_v34 = vmul.f32 0.0, %v462_v32 }
 0x244   :  { %v465_v35 = vmul.f32 %v463_v33, %v463_v33  ;;  %v466_v36 = vmul.f32 %v464_v34, %v464_v34 }
 0x246   :  { %v467_v37 = vadd.f32 %v466_v36, %v465_v35 }
 0x248   :  { %v468_v38 = vrot.slane %v467_v37, 4 }
 0x24a   :  { %v469_v39 = vadd.f32 %v468_v38, %v467_v37  ;;  %v815_v37 = vld [vmem:[%s1301_s9] ss:$0 sm:$0xff] }
 0x24c   :  { %v470_v40 = vrot.slane %v469_v39, 2 }
 0x24e   :  { %v471_v41 = vadd.f32 %v470_v40, %v469_v39 }
 0x250   :  { %v472_v42 = vrot.slane %v471_v41, 1 }
 0x252   :  { %v473_v44 = vadd.f32 %v472_v42, %v471_v41 }
 0x254   :  { %v474_v45 = vmul.f32 0.16666667, %v473_v44 }
 0x256   :  { %v475_v46 = vadd.f32 1e-05, %v474_v45 }
 0x258   :  { %990 = vrsqrt.f32 %v475_v46 }
 0x265   :  { %v991_v48 = vpop.eup %990 }
 0x266   :  { %v477_v49 = vmul.f32 %v991_v48, %v451_v47 }
 0x268   :  { %v482_v50 = vrot.slane %v477_v49, %v1245_v60 }
 0x26a   :  { %v484_v52 = vmul.f32 %v482_v50, %v463_v33  ;;  %v485_v53 = vmul.f32 %v482_v50, %v464_v34  ;;  %v604_v33 = vld [vmem:[%s1300_s8] sm:$0x1]  ;;  %s1133_s8 = smov [#allocation11]  }
 0x26b   :  { %s764_s30 = sshll.u32 %s1133_s8, 4  ;;  %s765_s30 = int_to_ptr.vmem [resolvable:$true] %s764_s30 }
 0x26c   :  { %v492_v54 = vadd.f32 %v806_v51, %v484_v52  ;;  %v493_v55 = vadd.f32 %v806_v51, %v485_v53  ;;  %s1094_s9 = scalar_lea.vmem %s765_s30, 256  ;;  %p1099_p12 = scmp.lt.s32.totalorder %s765_s30, %s765_s30 }
 0x26d   :  { %p1095_p11 = scmp.ne.s32.totalorder %s765_s30, %s1094_s9  ;;  %p1100_p13 = scmp.lt.s32.totalorder %s1094_s9, %s1094_s9 }
 0x26e   :  { %v494_v56 = vmax.f32 %v492_v54, 0.0  ;;  %v495_v57 = vmax.f32 %v493_v55, 0.0 }
 0x26f   :  { %p1101_p0 = por %p1100_p13, %p1099_p12 }
 0x270   :  { %v497_v58 = vmul.f32 0.0, %v495_v57  ;;  %v496_v59 = vmul.f32 %v1239_v43, %v494_v56 }
 0x271   :  { %p1102_p1 = pnand %p1101_p0, %p1095_p11 }
 0x272   :  { %v498_v61 = vpack.c.bf16 %v497_v58, %v496_v59 }
 0x274   :  { %910 = vmatmul.mubr.bf16.vlgmr.msra.gmra.mxu0 %v498_v61 }
 0x334   :  { %v597_v6 = vpop.f32.mrf.mxu0 }
 0x336   :  { %v911_v7 = vpop.f32.mrf.mxu0 }
 0x338   :  { %v600_v8 = vpop.f32.mrf.mxu0 }
 0x339   :  { %v606_v9 = vadd.f32 %v600_v8, %v597_v6 }
 0x33a   :  { %v912_v10 = vpop.f32.mrf.mxu0 }
 0x33b   :  { %v607_v11 = vrot.slane %v606_v9, 4 }
 0x33d   :  { %v608_v12 = vadd.f32 %v607_v11, %v606_v9 }
 0x33f   :  { %v609_v13 = vrot.slane %v608_v12, 2 }
 0x341   :  { %v610_v14 = vadd.f32 %v609_v13, %v608_v12 }
 0x343   :  { %v611_v15 = vrot.slane %v610_v14, 1 }
 0x345   :  { %v612_v16 = vadd.f32 %v611_v15, %v610_v14 }
 0x347   :  { %v613_v17 = vmul.f32 0.16666667, %v612_v16 }
 0x349   :  { %v614_v19 = vsub.f32 %v597_v6, %v613_v17  ;;  %v615_v20 = vsub.f32 %v600_v8, %v613_v17 }
 0x34b   :  { %v616_v21 = vmul.f32 %v1239_v43, %v614_v19  ;;  %v617_v22 = vmul.f32 0.0, %v615_v20 }
 0x34d   :  { %v618_v18 = vmul.f32 %v616_v21, %v616_v21  ;;  %v619_v23 = vmul.f32 %v617_v22, %v617_v22 }
 0x34f   :  { %v620_v24 = vadd.f32 %v619_v23, %v618_v18 }
 0x351   :  { %v621_v25 = vrot.slane %v620_v24, 4 }
 0x353   :  { %v622_v26 = vadd.f32 %v621_v25, %v620_v24 }
 0x355   :  { %v623_v27 = vrot.slane %v622_v26, 2 }
 0x357   :  { %v624_v28 = vadd.f32 %v623_v27, %v622_v26 }
 0x359   :  { %v625_v29 = vrot.slane %v624_v28, 1 }
 0x35b   :  { %v626_v30 = vadd.f32 %v625_v29, %v624_v28 }
 0x35d   :  { %v627_v31 = vmul.f32 0.16666667, %v626_v30 }
 0x35f   :  { %v628_v32 = vadd.f32 1e-05, %v627_v31 }
 0x361   :  { %992 = vrsqrt.f32 %v628_v32 }
 0x36e   :  { %v993_v34 = vpop.eup %992 }
 0x36f   :  { %v630_v35 = vmul.f32 %v993_v34, %v604_v33 }
 0x371   :  { %v635_v36 = vrot.slane %v630_v35, %v1245_v60 }
 0x373   :  { %v637_v38 = vmul.f32 %v635_v36, %v616_v21  ;;  %v638_v39 = vmul.f32 %v635_v36, %v617_v22 }
 0x375   :  { %v645_v40 = vadd.f32 %v815_v37, %v637_v38  ;;  %v646_v41 = vadd.f32 %v815_v37, %v638_v39 }
 0x377   :  { %v647_v42 = vmax.f32 %v645_v40, 0.0  ;;  %v648_v44 = vmax.f32 %v646_v41, 0.0 }
 0x379   :  { %v650_v45 = vmul.f32 0.0, %v648_v44  ;;  %v649_v46 = vmul.f32 %v1239_v43, %v647_v42 }
 0x37b   :  { %v651_v47 = vpack.c.bf16 %v650_v45, %v649_v46 }
 0x37d   :  { %930 = vmatmul.mubr.bf16.vlgmr.msra.gmra.mxu1 %v651_v47 }
 0x43d   :  { %v750_v48 = vpop.f32.mrf.mxu1 }
 0x43e   :  { %757 = vst [vmem:[#allocation11] sm:$0xff] %v750_v48 }
 0x43f   :  { %v931_v60 = vpop.f32.mrf.mxu1 }
 0x441   :  { %v753_v49 = vpop.f32.mrf.mxu1 }
 0x442   :  { %758 = vst [vmem:[#allocation11 + $0x8] sm:$0xff] %v753_v49 }
 0x443   :  { %v932_v50 = vpop.f32.mrf.mxu1 }
 0x444   :  { %1105 = shalt.err (!%p1102_p1)
}
 0x445   :  { %770 = dma.vmem_to_hbm [thread:$0]  %s765_s30, 256, %s1303_s11, [#allocation4], %s1127_s12, %s1127_s12, %s1128_s13  }
 0x446   :  { %1120 = dma.done.wait [#allocation4], 256  }
 0x447   :  { %1121 = vsyncadd [#allocation4], 4294967040 }
 0x448   :  { %774 = vsyncpa [#allocation3], 1 }
 0x449   :  { %775 = vsyncpa [#allocation6], 1 }
 0x44a   :  { %776 = vsyncpa [#allocation9], 1 }
 0x44b   :  { %777 = vsyncpa [#allocation4], 1 }

</bundles_post_ra>
